<compile_context>
chip_gen: v5e
topology: v5e:2x2
jax: 0.10.0
libtpu: 0.0.40
codegen_flags: <defaults>
</compile_context>

<pallas_src>
import jax
import jax.numpy as jnp
from jax.experimental import pallas as pl
from jax.experimental.pallas import tpu as pltpu


# ----------------------------------------------------------------------------
# Kernel 1: build DoRA-merged weight, tiled over the in_dim (column) axis.
#   w_ref  : (out_dim, tkw)   slice of original weight (native layout)
#   bt_ref : (out_dim, rank)  alpha * B^T  (alpha pre-folded, tiny)
#   at_ref : (rank,  tkw)     slice of A^T (tiny)
#   m_ref  : (1, tkw)         slice of magnitude vector
#   wn_ref : (out_dim, tkw)   merged + normalized + magnitude-scaled weight
# ----------------------------------------------------------------------------
def _dora_weight_kernel(w_ref, bt_ref, at_ref, m_ref, wn_ref):
    # alpha * (A @ B)^T slice == (alpha * B^T) @ A^T slice  -> (out_dim, tkw)
    lora_t = jnp.dot(bt_ref[...], at_ref[...], preferred_element_type=jnp.float32)
    combined = w_ref[...].astype(jnp.float32) + lora_t                  # (out, tkw)
    sumsq = jnp.sum(combined * combined, axis=0, keepdims=True)         # (1, tkw)
    scale = m_ref[...].astype(jnp.float32) / jnp.sqrt(sumsq)            # (1, tkw)
    wn_ref[...] = (combined * scale).astype(wn_ref.dtype)


# ----------------------------------------------------------------------------
# Kernel 2: tiled y = x @ W_new^T + b with f32 accumulator.
# ----------------------------------------------------------------------------
def _linear_kernel(x_ref, w_ref, b_ref, o_ref, acc_ref):
    k = pl.program_id(2)

    @pl.when(k == 0)
    def _():
        acc_ref[...] = jnp.zeros_like(acc_ref)

    # NT matmul: contract x's dim 1 with W_new's dim 1 (weight stays (out, in)).
    acc_ref[...] += jax.lax.dot_general(
        x_ref[...], w_ref[...],
        dimension_numbers=(((1,), (1,)), ((), ())),
        preferred_element_type=jnp.float32,
    )

    @pl.when(k == pl.num_programs(2) - 1)
    def _():
        o_ref[...] = (acc_ref[...] + b_ref[...].astype(jnp.float32)).astype(o_ref.dtype)


def linear_with_dora_merged(x, W, b, A, B, m, alpha, *, tm=128, tn=128, tk=128, tkw=128):
    """x: (M, in_dim), W: (out_dim, in_dim), b: (out_dim,),
    A: (in_dim, rank), B: (rank, out_dim), m: (1, in_dim)."""
    M, in_dim = x.shape
    out_dim, in_dim_w = W.shape
    assert in_dim_w == in_dim
    rank = A.shape[1]

    # Adapt tiles to small dims (full-extent blocks are always legal).
    tm = min(tm, M)
    tn = min(tn, out_dim)
    tk = min(tk, in_dim)
    tkw = min(tkw, in_dim)
    assert M % tm == 0 and out_dim % tn == 0 and in_dim % tk == 0 and in_dim % tkw == 0, \
        "shapes must be divisible by the chosen tiles (pad inputs otherwise)"

    # Tiny wrapper-side prep (rank-sized arrays only; the big W is never transposed).
    bt_scaled = (alpha * B.T).astype(W.dtype)     # (out_dim, rank)
    at = A.T.astype(W.dtype)                      # (rank, in_dim)
    m2d = m.reshape(1, in_dim)
    b2d = b.reshape(1, out_dim)

    # --- Pass 1: DoRA-merged weight (once per call; one read + one write of W) ---
    w_new = pl.pallas_call(
        _dora_weight_kernel,
        out_shape=jax.ShapeDtypeStruct((out_dim, in_dim), W.dtype),
        grid_spec=pltpu.PrefetchScalarGridSpec(
            num_scalar_prefetch=0,
            grid=(in_dim // tkw,),
            in_specs=[
                pl.BlockSpec((out_dim, tkw), lambda i: (0, i)),
                pl.BlockSpec((out_dim, rank), lambda i: (0, 0)),
                pl.BlockSpec((rank, tkw), lambda i: (0, i)),
                pl.BlockSpec((1, tkw), lambda i: (0, i)),
            ],
            out_specs=pl.BlockSpec((out_dim, tkw), lambda i: (0, i)),
        ),
        compiler_params=pltpu.CompilerParams(dimension_semantics=("parallel",)),
    )(W, bt_scaled, at, m2d)
    # TODO(synk): for very large out_dim, tile the norm reduction (two-pass) instead
    # of taking the full out_dim extent per block.

    # --- Pass 2: tiled linear against the merged weight ---
    itemsize = jnp.dtype(x.dtype).itemsize
    cost = pl.CostEstimate(
        flops=2 * M * in_dim * out_dim,
        transcendentals=0,
        bytes_accessed=(M * in_dim + out_dim * in_dim + M * out_dim) * itemsize,
    )
    out = pl.pallas_call(
        _linear_kernel,
        out_shape=jax.ShapeDtypeStruct((M, out_dim), x.dtype),
        grid_spec=pltpu.PrefetchScalarGridSpec(
            num_scalar_prefetch=0,
            grid=(M // tm, out_dim // tn, in_dim // tk),
            in_specs=[
                pl.BlockSpec((tm, tk), lambda i, j, k: (i, k)),
                pl.BlockSpec((tn, tk), lambda i, j, k: (j, k)),
                pl.BlockSpec((1, tn), lambda i, j, k: (0, j)),
            ],
            out_specs=pl.BlockSpec((tm, tn), lambda i, j, k: (i, j)),
            scratch_shapes=[pltpu.VMEM((tm, tn), jnp.float32)],
        ),
        compiler_params=pltpu.CompilerParams(
            dimension_semantics=("parallel", "parallel", "arbitrary")),
        cost_estimate=cost,
    )(x, w_new, b2d)
    return out


if __name__ == "__main__":
    # Small but tile-friendly shapes (multiples of (8, 128) so the grid is real).
    batch, in_dim, out_dim, rank, alpha = 256, 512, 256, 8, 2.0

    key = jax.random.PRNGKey(0)
    kx, kw, kb, ka, kbm = jax.random.split(key, 5)

    x = jax.random.normal(kx, (batch, in_dim), dtype=jnp.float32)
    W = jax.random.normal(kw, (out_dim, in_dim), dtype=jnp.float32) * 0.1
    b = jax.random.normal(kb, (out_dim,), dtype=jnp.float32) * 0.1
    # LoRALayer init: A ~ N(0,1)/sqrt(rank); B would be zeros -> small random for testability.
    A = jax.random.normal(ka, (in_dim, rank), dtype=jnp.float32) / jnp.sqrt(float(rank))
    B = jax.random.normal(kbm, (rank, out_dim), dtype=jnp.float32) * 0.05
    # DoRA magnitude vector init: column norms of the original weight.
    m = jnp.sqrt(jnp.sum(W * W, axis=0, keepdims=True))    # (1, in_dim)

    out = linear_with_dora_merged(x, W, b, A, B, m, alpha)
    out = jax.block_until_ready(out)

    # Pure-JAX reference (same math as the PyTorch module).
    hi = jax.lax.Precision.HIGHEST
    lora = jnp.dot(A, B, precision=hi)                      # (in, out)
    combined = W + alpha * lora.T                           # (out, in)
    col_norm = jnp.sqrt(jnp.sum(combined * combined, axis=0, keepdims=True))
    new_w = m * (combined / col_norm)
    ref = jnp.dot(x, new_w.T, precision=hi) + b

    assert out.shape == ref.shape
    assert jnp.allclose(out, ref, atol=1e-3, rtol=1e-3), "mismatch vs reference"

    print("KERNEL_OK")
</pallas_src>

<mosaic_0001>
module attributes {stable_mosaic.version = 11 : i64} {
  func.func @_dora_weight_kernel(%arg0: i32, %arg1: memref<256x128xf32, #tpu.memory_space<vmem>>, %arg2: memref<256x8xf32, #tpu.memory_space<vmem>>, %arg3: memref<8x128xf32, #tpu.memory_space<vmem>>, %arg4: memref<1x128xf32, #tpu.memory_space<vmem>>, %arg5: memref<256x128xf32, #tpu.memory_space<vmem>>) attributes {dimension_semantics = [#tpu.dimension_semantics<parallel>], iteration_bounds = array<i64: 4>, scalar_prefetch = 0 : i64, scratch_operands = 0 : i64, tpu.core_type = #tpu.core_type<tc>, window_params = [{transform_indices = @transform_0, window_bounds = array<i64: 256, 128>}, {pipeline_mode = #tpu.pipeline_mode<synchronous>, transform_indices = @transform_1, window_bounds = array<i64: 256, 8>}, {transform_indices = @transform_2, window_bounds = array<i64: 8, 128>}, {transform_indices = @transform_3, window_bounds = array<i64: 1, 128>}, {transform_indices = @transform_4, window_bounds = array<i64: 256, 128>}]} {
    %c0 = arith.constant 0 : index
    %c0_0 = arith.constant 0 : index
    %0 = vector.load %arg2[%c0, %c0_0] : memref<256x8xf32, #tpu.memory_space<vmem>>, vector<256x8xf32>
    %c0_1 = arith.constant 0 : index
    %c0_2 = arith.constant 0 : index
    %1 = vector.load %arg3[%c0_1, %c0_2] : memref<8x128xf32, #tpu.memory_space<vmem>>, vector<8x128xf32>
    %cst = arith.constant dense<0.000000e+00> : vector<256x128xf32>
    %2 = tpu.matmul %0, %1, %cst {dimension_numbers = #tpu.dot_dimension_numbers<[1], [0], [0], [1], [0, 0, 1, 1], [], []>} : vector<256x8xf32>, vector<8x128xf32>, vector<256x128xf32> -> vector<256x128xf32>
    %c0_3 = arith.constant 0 : index
    %c0_4 = arith.constant 0 : index
    %3 = vector.load %arg1[%c0_3, %c0_4] : memref<256x128xf32, #tpu.memory_space<vmem>>, vector<256x128xf32>
    %4 = arith.addf %3, %2 : vector<256x128xf32>
    %5 = arith.mulf %4, %4 : vector<256x128xf32>
    %cst_5 = arith.constant dense<0.000000e+00> : vector<128xf32>
    %6 = vector.multi_reduction <add>, %5, %cst_5 [0] : vector<256x128xf32> to vector<128xf32>
    %7 = vector.shape_cast %6 : vector<128xf32> to vector<1x128xf32>
    %c0_6 = arith.constant 0 : index
    %c0_7 = arith.constant 0 : index
    %8 = vector.load %arg4[%c0_6, %c0_7] : memref<1x128xf32, #tpu.memory_space<vmem>>, vector<1x128xf32>
    %9 = math.sqrt %7 : vector<1x128xf32>
    %10 = arith.divf %8, %9 : vector<1x128xf32>
    %11 = vector.broadcast %10 : vector<1x128xf32> to vector<256x128xf32>
    %12 = arith.mulf %4, %11 : vector<256x128xf32>
    %c0_8 = arith.constant 0 : index
    %c0_9 = arith.constant 0 : index
    %13 = vector.load %arg5[%c0_8, %c0_9] : memref<256x128xf32, #tpu.memory_space<vmem>>, vector<256x128xf32>
    tpu.vector_store %arg5[%c0_8, %c0_9], %12 {strides = array<i32>} : memref<256x128xf32, #tpu.memory_space<vmem>>, vector<256x128xf32>,
    return
  }
  func.func @transform_0(%arg0: i32) -> (i32, i32) {
    %c0_i32 = arith.constant 0 : i32
    %c0_i32_0 = arith.constant 0 : i32
    return %c0_i32, %arg0 : i32, i32
  }
  func.func @transform_1(%arg0: i32) -> (i32, i32) {
    %c0_i32 = arith.constant 0 : i32
    %c0_i32_0 = arith.constant 0 : i32
    %c0_i32_1 = arith.constant 0 : i32
    return %c0_i32, %c0_i32_0 : i32, i32
  }
  func.func @transform_2(%arg0: i32) -> (i32, i32) {
    %c0_i32 = arith.constant 0 : i32
    %c0_i32_0 = arith.constant 0 : i32
    return %c0_i32, %arg0 : i32, i32
  }
  func.func @transform_3(%arg0: i32) -> (i32, i32) {
    %c0_i32 = arith.constant 0 : i32
    %c0_i32_0 = arith.constant 0 : i32
    return %c0_i32, %arg0 : i32, i32
  }
  func.func @transform_4(%arg0: i32) -> (i32, i32) {
    %c0_i32 = arith.constant 0 : i32
    %c0_i32_0 = arith.constant 0 : i32
    return %c0_i32, %arg0 : i32, i32
  }
}

</mosaic_0001>

<bundles_post_ra>
// kernel: tpu_custom_call.1
= control target key start
LH: loop header
LB: loop body
LE: loop exit
PB: predicated region body
PF: predicated region fallthrough
CT: control target
= control target key end

     0   :  { %9 = vsyncpa [#allocation3], 0  ;;  %s1613_s0 = inlined_call_operand.hbm [shape: f32[256,512], index: 0, kind: input, shape index: {}]   ;;  %s1614_s1 = inlined_call_operand.vmem [shape: f32[256,8], index: 1, kind: input, shape index: {}]   ;;  %s1615_s2 = inlined_call_operand.vmem [shape: f32[8,512], index: 2, kind: input, shape index: {}]   ;;  %s1616_s3 = inlined_call_operand.vmem [shape: f32[1,512], index: 3, kind: input, shape index: {}]   ;;  %s1617_s4 = inlined_call_operand.hbm [shape: f32[256,512], index: 4, kind: output, shape index: {}]  }
   0x1   :  { %11 = vsyncpa [#allocation3 + $0x1], 0 }
   0x2   :  { %12 = vsyncpa [#allocation4], 0 }
   0x3   :  { %14 = vsyncpa [#allocation4 + $0x1], 0  ;;  %s1061_s15 = smov 0   ;;  %s1063_s16 = smov 0  }
   0x4   :  { %s1065_s17 = smov 0   ;;  %s1067_s18 = smov 0  }
   0x5 LB: > { %s1082_s19 = sadd.s32 4294967295, %s1028_s18   ;;  %s828_s20 = sadd.s32 4294967294, %s1028_s18   ;;  %s1028_s18 = sphi %s1067_s18, %s1626_s18   ;;  %s1024_s17 = sphi %s1065_s17, %s1625_s17   ;;  %s1020_s16 = sphi %s1063_s16, %s1624_s16   ;;  %s1016_s15 = sphi %s1061_s15, %s1623_s15  }
   0x6   : > { %s1086_s21 = sadd.s32 1, %s1028_s18   ;;  %s27_s22 = sadd.s32 1, %s1024_s17 }
   0x7   : > { %s24_s23 = ssub.s32 %s1028_s18, %s1086_s21  ;;  %p34_p0 = scmp.ne.s32.totalorder %s1024_s17, %s1020_s16 }
   0x8   : > { %p25_p1 = scmp.eq.s32.totalorder %s24_s23, 0  ;;  %p35_p2 = scmp.eq.s32.totalorder %s1028_s18, 0 }
   0x9   : > { %p40_p3 = scmp.ne.s32.totalorder %s1020_s16, %s1016_s15  ;;  %p41_p4 = scmp.eq.s32.totalorder %s1082_s19, 0 }
   0xa   : > { %s1098_s24 = scalar_select %p25_p1, %s1024_s17, %s27_s22  }
   0xb   : > { %p1100_p5 = por %p35_p2, %p34_p0  ;;  %p1104_p6 = por %p41_p4, %p40_p3 }
   0xc   : > { %p137_p7 = scmp.eq.s32.totalorder %s1082_s19, 3  ;;  %p143_p8 = scmp.eq.s32.totalorder %s828_s20, 3 }
   0xd   : > { %p888_p9 = scmp.lt.s32.totalorder %s1028_s18, 4  ;;  %s166_s29 = sand.u32 1, %s1024_s17  }
   0xe   : > { %p1110_p10 = por %p137_p7, %p34_p0  ;;  %p1114_p11 = por %p143_p8, %p40_p3 }
   0xf   : > { %s832_s30 = sshll.u32 %s1028_s18, 3  ;;  %s831_s5 = sshll.u32 %s166_s29, 8 }
  0x10   : > { %s174_s8 = scalar_lea.hbm %s1613_s0, %s832_s30  ;;  %s170_s10 = scalar_lea.vmem [#allocation2], %s831_s5 }
  0x11   : > { %s175_s9 = sshll.u32 %s174_s8, 4  ;;  %s177_s11 = sshll.u32 %s170_s10, 4  ;;  %s176_s9 = int_to_ptr.hbm [resolvable:$true] %s175_s9  ;;  %s178_s11 = int_to_ptr.vmem [resolvable:$true] %s177_s11 }
  0x12   : > { %p1125_p12 = pnand %p888_p9, %p1100_p5  ;;  %p833_p13 = scmp.ge.s32.totalorder %s1028_s18, 1 }
  0x13   : > { %s167_s13 = scalar_lea.sflag [#allocation3], %s166_s29  ;;  %s932_s14 = sshra.s32 %s176_s9, 4  ;;  %s933_s14 = int_to_ptr.hbm [resolvable:$true] %s932_s14 }
  0x14   : > { %s934_s20 = scalar_lea.hbm %s933_s14, 256  ;;  %p936_p1 = pneg %p1125_p12 }
  0x15   : > { %p935_p0 = scmp.ne.s32.totalorder %s933_s14, %s934_s20  ;;  %s939_s30 = scalar_lea.hbm %s1613_s0, 1024 }
  0x16   : > { %p940_p4 = scmp.lt.s32.totalorder %s933_s14, %s1613_s0  ;;  %p941_p5 = scmp.lt.s32.totalorder %s939_s30, %s934_s20 }
  0x17   : > { %p937_p2 = pnand %p936_p1, %p935_p0 }
  0x18   : > { %p942_p7 = por %p941_p5, %p940_p4 }
  0x19   : > { %p938_p3 = pneg %p937_p2 }
  0x1b   : > { %p943_p8 = pnand %p942_p7, %p938_p3 }
  0x1d   : > { %946 = shalt.err (!%p943_p8)
}
  0x1e   : > { %s1030_s29 = smov 512   ;;  %s1031_s6 = smov 128  }
  0x1f   : > { %s1032_s7 = smov 8   ;;  %p198_p9 = scmp.lt.s32.totalorder %s1028_s18, 5 }
  0x20   : > { %883 = dma.hbm_to_vmem [thread:$0]  (!%p1125_p12), %s176_s9, 4096, %s178_s11, %s167_s13, %s1030_s29, %s1031_s6, %s1032_s7  }
  0x21   : > { %p199_p0 = pnand %p833_p13, %p198_p9 }
  0x22   : > { %s1144_s8 = sand.u32 (!%p199_p0), 1, %s1020_s16  }
  0x23   : > { %202 = sbr.rel (%p199_p0) target bundleno = 377 (0x179), region = 36  ;;  %s834_s10 = sshll.u32 (!%p199_p0), %s1144_s8, 8 }
  0x24   : > { %s205_s14 = scalar_lea.sflag (!%p199_p0), [#allocation3], %s1144_s8  ;;  %s1150_s20 = scalar_lea.vmem (!%p199_p0), [#allocation2], %s834_s10 }
  0x28   : > { %1007 = dma.done.wait (%p1104_p6), %s205_s14, 4096  }
  0x29   : > { %1009 = vsyncadd (%p1104_p6), %s205_s14, 4294963200  ;;  %p241_p12 = scmp.lt.s32.totalorder %s1082_s19, 3  ;;  %vm281_vm0 = vcmask 64512   ;;  %v248_v1 = vld [vmem:[%s1614_s1] sm:$0xff]  ;;  %v249_v4 = vld [vmem:[%s1614_s1 + $0x8] sm:$0xff]  ;;  %s720_s29 = scalar_lea.sflag [#allocation4], %s1144_s8 }
  0x2a   : > { %v256_v2 = vld [vmem:[%s1614_s1 + $0x40] sm:$0xff]  ;;  %v257_v5 = vld [vmem:[%s1614_s1 + $0x48] sm:$0xff]  ;;  %v250_v8 = vld [vmem:[%s1614_s1 + $0x10] sm:$0xff]  ;;  %s982_s12 = scalar_lea.hbm %s1617_s4, 1024 }
  0x2b   : > { %s1158_s9 = scalar_select %p241_p12, %s1082_s19, 3  ;;  %v264_v3 = vld [vmem:[%s1614_s1 + $0x80] sm:$0xff]  ;;  %v265_v6 = vld [vmem:[%s1614_s1 + $0x88] sm:$0xff]  ;;  %v258_v9 = vld [vmem:[%s1614_s1 + $0x50] sm:$0xff] }
  0x2c   : > { %v272_v7 = vld [vmem:[%s1614_s1 + $0xc0] sm:$0xff]  ;;  %v266_v10 = vld [vmem:[%s1614_s1 + $0x90] sm:$0xff]  ;;  %v273_v11 = vld [vmem:[%s1614_s1 + $0xc8] sm:$0xff] }
  0x2d   : > { %s836_s11 = sshll.u32 %s1158_s9, 3  ;;  %v251_v12 = vld [vmem:[%s1614_s1 + $0x18] sm:$0xff]  ;;  %v274_v15 = vld [vmem:[%s1614_s1 + $0xd0] sm:$0xff]  ;;  %v252_v16 = vld [vmem:[%s1614_s1 + $0x20] sm:$0xff]  ;;  %s247_s23 = scalar_lea.vmem %s1616_s3, %s1158_s9 }
  0x2e   : > { %s244_s22 = scalar_lea.vmem %s1615_s2, %s836_s11  ;;  %v259_v13 = vld [vmem:[%s1614_s1 + $0x58] sm:$0xff]  ;;  %v260_v17 = vld [vmem:[%s1614_s1 + $0x60] sm:$0xff]  ;;  %v253_v20 = vld [vmem:[%s1614_s1 + $0x28] sm:$0xff]  ;;  %s1490_s9 = scalar_lea.vmem [#allocation5], %s834_s10 }
  0x2f   : > { %v280_v0 = vld [vmem:[%s244_s22] sm:$0xff]  ;;  %v267_v14 = vld [vmem:[%s1614_s1 + $0x98] sm:$0xff]  ;;  %v261_v21 = vld [vmem:[%s1614_s1 + $0x68] sm:$0xff]  ;;  %s870_s10 = sshll.u32 %s1082_s19, 3  ;;  %s731_s19 = sshll.u32 %s1490_s9, 4  ;;  %s732_s19 = int_to_ptr.vmem [resolvable:$true] %s731_s19 }
  0x30   : > { %393 = vmatpush.msra.mxu0 %v280_v0  ;;  %873 = vmatpush.msra.mxu1 %v280_v0  ;;  %v275_v18 = vld [vmem:[%s1614_s1 + $0xd8] sm:$0xff]  ;;  %v268_v19 = vld [vmem:[%s1614_s1 + $0xa0] sm:$0xff]  ;;  %v269_v23 = vld [vmem:[%s1614_s1 + $0xa8] sm:$0xff]  ;;  %s730_s25 = scalar_lea.hbm %s1617_s4, %s870_s10 }
  0x31   : > { %837 = vmatmul.msk.f32.vlgmr.msra.gmra.mxu0 %vm281_vm0, %v248_v1  ;;  %845 = vmatmul.msk.f32.vlgmr.msra.gmra.mxu1 %vm281_vm0, %v256_v2  ;;  %v276_v22 = vld [vmem:[%s1614_s1 + $0xe0] sm:$0xff]  ;;  %v254_v24 = vld [vmem:[%s1614_s1 + $0x30] sm:$0xff]  ;;  %v277_v26 = vld [vmem:[%s1614_s1 + $0xe8] sm:$0xff]  ;;  %s733_s5 = sshll.u32 %s730_s25, 4  ;;  %s734_s5 = int_to_ptr.hbm [resolvable:$true] %s733_s5 }
  0x32   : > { %874 = vmatpush.msra.mxu2 %v280_v0  ;;  %875 = vmatpush.msra.mxu3 %v280_v0  ;;  %v262_v25 = vld [vmem:[%s1614_s1 + $0x70] sm:$0xff]  ;;  %v255_v28 = vld [vmem:[%s1614_s1 + $0x38] sm:$0xff]  ;;  %v492_v47 = vld [vmem:[%s1150_s20 + $0x8] sm:$0xff]  ;;  %s976_s6 = sshra.s32 %s734_s5, 4  ;;  %s977_s6 = int_to_ptr.hbm [resolvable:$true] %s976_s6 }
  0x33   : > { %853 = vmatmul.msk.f32.vlgmr.msra.gmra.mxu2 %vm281_vm0, %v264_v3  ;;  %861 = vmatmul.msk.f32.vlgmr.msra.gmra.mxu3 %vm281_vm0, %v272_v7  ;;  %v270_v27 = vld [vmem:[%s1614_s1 + $0xb0] sm:$0xff]  ;;  %v263_v29 = vld [vmem:[%s1614_s1 + $0x78] sm:$0xff]  ;;  %v491_v49 = vld [vmem:[%s1150_s20] sm:$0xff]  ;;  %s978_s7 = scalar_lea.hbm %s977_s6, 256  ;;  %p983_p2 = scmp.lt.s32.totalorder %s977_s6, %s1617_s4 }
  0x34   : > { %v278_v30 = vld [vmem:[%s1614_s1 + $0xf0] sm:$0xff]  ;;  %v271_v31 = vld [vmem:[%s1614_s1 + $0xb8] sm:$0xff]  ;;  %v495_v57 = vld [vmem:[%s1150_s20 + $0x20] sm:$0xff]  ;;  %p979_p6 = scmp.ne.s32.totalorder %s977_s6, %s978_s7  ;;  %p984_p3 = scmp.lt.s32.totalorder %s982_s12, %s978_s7 }
  0x35   : > { %v279_v32 = vld [vmem:[%s1614_s1 + $0xf8] sm:$0xff]  ;;  %v493_v50 = vld [vmem:[%s1150_s20 + $0x10] sm:$0xff]  ;;  %v496_v60 = vld [vmem:[%s1150_s20 + $0x28] sm:$0xff] }
  0x36   : > { %v494_v53 = vld [vmem:[%s1150_s20 + $0x18] sm:$0xff]  ;;  %v497_v2 = vld [vmem:[%s1150_s20 + $0x30] sm:$0xff]  ;;  %p980_p13 = pnand %p979_p6, %p1110_p10  ;;  %p985_p4 = por %p984_p3, %p983_p2 }
  0x38   : > { %p981_p1 = pneg %p980_p13 }
  0x39   : > { %838 = vmatmul.msk.f32.gmra.mxu0 %vm281_vm0, %v249_v4  ;;  %846 = vmatmul.msk.f32.gmra.mxu1 %vm281_vm0, %v257_v5 }
  0x3a   : > { %p986_p5 = pnand %p985_p4, %p981_p1 }
  0x3b   : > { %854 = vmatmul.msk.f32.gmra.mxu2 %vm281_vm0, %v265_v6  ;;  %862 = vmatmul.msk.f32.gmra.mxu3 %vm281_vm0, %v273_v11 }
  0x41   : > { %839 = vmatmul.msk.f32.gmra.mxu0 %vm281_vm0, %v250_v8  ;;  %847 = vmatmul.msk.f32.gmra.mxu1 %vm281_vm0, %v258_v9 }
  0x43   : > { %855 = vmatmul.msk.f32.gmra.mxu2 %vm281_vm0, %v266_v10  ;;  %863 = vmatmul.msk.f32.gmra.mxu3 %vm281_vm0, %v274_v15 }
  0x49   : > { %840 = vmatmul.msk.f32.gmra.mxu0 %vm281_vm0, %v251_v12  ;;  %848 = vmatmul.msk.f32.gmra.mxu1 %vm281_vm0, %v259_v13  ;;  %v499_v13 = vld [vmem:[%s1150_s20 + $0x40] sm:$0xff] }
  0x4b   : > { %856 = vmatmul.msk.f32.gmra.mxu2 %vm281_vm0, %v267_v14  ;;  %864 = vmatmul.msk.f32.gmra.mxu3 %vm281_vm0, %v275_v18  ;;  %v498_v14 = vld [vmem:[%s1150_s20 + $0x38] sm:$0xff] }
  0x51   : > { %841 = vmatmul.msk.f32.gmra.mxu0 %vm281_vm0, %v252_v16  ;;  %849 = vmatmul.msk.f32.gmra.mxu1 %vm281_vm0, %v260_v17  ;;  %v500_v17 = vld [vmem:[%s1150_s20 + $0x48] sm:$0xff] }
  0x53   : > { %857 = vmatmul.msk.f32.gmra.mxu2 %vm281_vm0, %v268_v19  ;;  %865 = vmatmul.msk.f32.gmra.mxu3 %vm281_vm0, %v276_v22 }
  0x59   : > { %842 = vmatmul.msk.f32.gmra.mxu0 %vm281_vm0, %v253_v20  ;;  %850 = vmatmul.msk.f32.gmra.mxu1 %vm281_vm0, %v261_v21 }
  0x5b   : > { %858 = vmatmul.msk.f32.gmra.mxu2 %vm281_vm0, %v269_v23  ;;  %866 = vmatmul.msk.f32.gmra.mxu3 %vm281_vm0, %v277_v26  ;;  %v501_v23 = vld [vmem:[%s1150_s20 + $0x50] sm:$0xff] }
  0x61   : > { %843 = vmatmul.msk.f32.gmra.mxu0 %vm281_vm0, %v254_v24  ;;  %851 = vmatmul.msk.f32.gmra.mxu1 %vm281_vm0, %v262_v25 }
  0x63   : > { %859 = vmatmul.msk.f32.gmra.mxu2 %vm281_vm0, %v270_v27  ;;  %867 = vmatmul.msk.f32.gmra.mxu3 %vm281_vm0, %v278_v30 }
  0x69   : > { %844 = vmatmul.msk.f32.gmra.mxu0 %vm281_vm0, %v255_v28  ;;  %852 = vmatmul.msk.f32.gmra.mxu1 %vm281_vm0, %v263_v29  ;;  %v502_v28 = vld [vmem:[%s1150_s20 + $0x58] sm:$0xff] }
  0x6b   : > { %860 = vmatmul.msk.f32.gmra.mxu2 %vm281_vm0, %v271_v31  ;;  %868 = vmatmul.msk.f32.gmra.mxu3 %vm281_vm0, %v279_v32  ;;  %v503_v32 = vld [vmem:[%s1150_s20 + $0x60] sm:$0xff] }
  0xae   : > { %v395_v33 = vpop.f32.mrf.mxu0  ;;  %v419_v34 = vpop.f32.mrf.mxu1 }
  0xaf   : > { %v1310_v55 = vadd.f32 %v491_v49, %v395_v33  ;;  %v1346_v20 = vadd.f32 %v499_v13, %v419_v34 }
  0xb1   : > { %v555_v62 = vmul.f32 %v1310_v55, %v1310_v55  ;;  %v563_v29 = vmul.f32 %v1346_v20, %v1346_v20 }
  0xb6   : > { %v398_v35 = vpop.f32.mrf.mxu0  ;;  %v422_v36 = vpop.f32.mrf.mxu1 }
  0xb7   : > { %v1292_v37 = vpop.f32.mrf.mxu2  ;;  %v1296_v43 = vpop.f32.mrf.mxu3  ;;  %v1305_v52 = vadd.f32 %v492_v47, %v398_v35  ;;  %v1353_v25 = vadd.f32 %v500_v17, %v422_v36 }
  0xb9   : > { %v556_v58 = vmul.f32 %v1305_v52, %v1305_v52  ;;  %v564_v34 = vmul.f32 %v1353_v25, %v1353_v25 }
  0xbb   : > { %v587_v4 = vadd.f32 %v556_v58, %v555_v62 }
  0xbe   : > { %v401_v38 = vpop.f32.mrf.mxu0  ;;  %v425_v39 = vpop.f32.mrf.mxu1 }
  0xbf   : > { %v1294_v40 = vpop.f32.mrf.mxu2  ;;  %v1301_v48 = vpop.f32.mrf.mxu3  ;;  %v1312_v56 = vadd.f32 %v493_v50, %v401_v38  ;;  %v1360_v30 = vadd.f32 %v501_v23, %v425_v39  ;;  %v504_v38 = vld [vmem:[%s1150_s20 + $0x68] sm:$0xff]  ;;  %v505_v39 = vld [vmem:[%s1150_s20 + $0x70] sm:$0xff]  ;;  %v506_v50 = vld [vmem:[%s1150_s20 + $0x78] sm:$0xff] }
  0xc1   : > { %v557_v63 = vmul.f32 %v1312_v56, %v1312_v56 }
  0xc3   : > { %v588_v7 = vadd.f32 %v587_v4, %v557_v63  ;;  %v507_v63 = vld [vmem:[%s1150_s20 + $0x80] sm:$0xff] }
  0xc6   : > { %v404_v41 = vpop.f32.mrf.mxu0  ;;  %v428_v42 = vpop.f32.mrf.mxu1 }
  0xc7   : > { %v1298_v45 = vpop.f32.mrf.mxu2  ;;  %v1317_v59 = vadd.f32 %v494_v53, %v404_v41  ;;  %v1327_v3 = vpop.f32.mrf.mxu3  ;;  %v1365_v35 = vadd.f32 %v502_v28, %v428_v42  ;;  %v565_v41 = vmul.f32 %v1360_v30, %v1360_v30 }
  0xc9   : > { %v558_v5 = vmul.f32 %v1317_v59, %v1317_v59 }
  0xcb   : > { %v589_v11 = vadd.f32 %v588_v7, %v558_v5  ;;  %v1389_v5 = vadd.f32 %v507_v63, %v1292_v37 }
  0xcd   : > { %v571_v37 = vmul.f32 %v1389_v5, %v1389_v5 }
  0xce   : > { %v407_v44 = vpop.f32.mrf.mxu0  ;;  %v431_v46 = vpop.f32.mrf.mxu1 }
  0xcf   : > { %v1308_v54 = vpop.f32.mrf.mxu2  ;;  %v1324_v0 = vadd.f32 %v495_v57, %v407_v44  ;;  %v1351_v24 = vpop.f32.mrf.mxu3  ;;  %v1370_v44 = vadd.f32 %v503_v32, %v431_v46  ;;  %v514_v32 = vld [vmem:[%s1150_s20 + $0xb8] sm:$0xff] }
  0xd1   : > { %v559_v8 = vmul.f32 %v1324_v0, %v1324_v0  ;;  %v567_v58 = vmul.f32 %v1370_v44, %v1370_v44 }
  0xd3   : > { %v590_v15 = vadd.f32 %v589_v11, %v559_v8 }
  0xd6   : > { %v410_v51 = vpop.f32.mrf.mxu0  ;;  %v434_v61 = vpop.f32.mrf.mxu1 }
  0xd7   : > { %v1331_v6 = vadd.f32 %v496_v60, %v410_v51  ;;  %v1337_v10 = vpop.f32.mrf.mxu2  ;;  %v566_v51 = vmul.f32 %v1365_v35, %v1365_v35  ;;  %v1376_v53 = vadd.f32 %v504_v38, %v434_v61  ;;  %v479_v57 = vpop.f32.mrf.mxu3  ;;  %v508_v61 = vld [vmem:[%s1150_s20 + $0x88] sm:$0xff] }
  0xd8   : > { %v1397_v13 = vadd.f32 %v508_v61, %v1294_v40 }
  0xd9   : > { %v560_v12 = vmul.f32 %v1331_v6, %v1331_v6 }
  0xdb   : > { %v591_v21 = vadd.f32 %v590_v15, %v560_v12  ;;  %v509_v12 = vld [vmem:[%s1150_s20 + $0x90] sm:$0xff]  ;;  %v510_v15 = vld [vmem:[%s1150_s20 + $0x98] sm:$0xff] }
  0xdc   : > { %v1409_v23 = vadd.f32 %v510_v15, %v1308_v54 }
  0xde   : > { %v413_v1 = vpop.f32.mrf.mxu0  ;;  %v437_v19 = vpop.f32.mrf.mxu1 }
  0xdf   : > { %v1335_v9 = vadd.f32 %v497_v2, %v413_v1  ;;  %v458_v33 = vpop.f32.mrf.mxu2  ;;  %v1380_v46 = vadd.f32 %v505_v39, %v437_v19  ;;  %v568_v1 = vmul.f32 %v1376_v53, %v1376_v53  ;;  %v482_v19 = vpop.f32.mrf.mxu3  ;;  %v515_v39 = vld [vmem:[%s1150_s20 + $0xc0] sm:$0xff] }
  0xe1   : > { %v561_v16 = vmul.f32 %v1335_v9, %v1335_v9  ;;  %v569_v8 = vmul.f32 %v1380_v46, %v1380_v46 }
  0xe3   : > { %v592_v26 = vadd.f32 %v591_v21, %v561_v16  ;;  %v1403_v16 = vadd.f32 %v509_v12, %v1298_v45  ;;  %v572_v21 = vmul.f32 %v1397_v13, %v1397_v13 }
  0xe6   : > { %v416_v18 = vpop.f32.mrf.mxu0  ;;  %v440_v49 = vpop.f32.mrf.mxu1 }
  0xe7   : > { %v1348_v22 = vadd.f32 %v498_v14, %v416_v18  ;;  %v1382_v62 = vadd.f32 %v506_v50, %v440_v49  ;;  %v461_v4 = vpop.f32.mrf.mxu2  ;;  %v511_v18 = vld [vmem:[%s1150_s20 + $0xa0] sm:$0xff] }
  0xe8   : > { %v1415_v28 = vadd.f32 %v511_v18, %v1337_v10 }
  0xe9   : > { %v562_v27 = vmul.f32 %v1348_v22, %v1348_v22  ;;  %v570_v11 = vmul.f32 %v1382_v62, %v1382_v62 }
  0xea   : > { %v575_v38 = vmul.f32 %v1415_v28, %v1415_v28 }
  0xeb   : > { %v593_v31 = vadd.f32 %v592_v26, %v562_v27  ;;  %v512_v26 = vld [vmem:[%s1150_s20 + $0xa8] sm:$0xff]  ;;  %v573_v27 = vmul.f32 %v1403_v16, %v1403_v16 }
  0xec   : > { %v1421_v54 = vadd.f32 %v512_v26, %v458_v33  ;;  %v1434_v33 = vadd.f32 %v515_v39, %v1296_v43 }
  0xed   : > { %v594_v36 = vadd.f32 %v593_v31, %v563_v29  ;;  %v513_v29 = vld [vmem:[%s1150_s20 + $0xb0] sm:$0xff] }
  0xee   : > { %v576_v49 = vmul.f32 %v1421_v54, %v1421_v54 }
  0xef   : > { %v595_v47 = vadd.f32 %v594_v36, %v564_v34  ;;  %v464_v31 = vpop.f32.mrf.mxu2  ;;  %v574_v34 = vmul.f32 %v1409_v23, %v1409_v23 }
  0xf0   : > { %v1427_v10 = vadd.f32 %v514_v32, %v464_v31 }
  0xf1   : > { %v596_v42 = vadd.f32 %v595_v47, %v565_v41  ;;  %v1425_v47 = vadd.f32 %v513_v29, %v461_v4  ;;  %v518_v4 = vld [vmem:[%s1150_s20 + $0xd8] sm:$0xff] }
  0xf2   : > { %v578_v63 = vmul.f32 %v1427_v10, %v1427_v10 }
  0xf3   : > { %v597_v60 = vadd.f32 %v596_v42, %v566_v51  ;;  %v516_v51 = vld [vmem:[%s1150_s20 + $0xc8] sm:$0xff]  ;;  %v485_v42 = vpop.f32.mrf.mxu3 }
  0xf5   : > { %v598_v2 = vadd.f32 %v597_v60, %v567_v58  ;;  %v577_v60 = vmul.f32 %v1425_v47, %v1425_v47 }
  0xf7   : > { %v599_v7 = vadd.f32 %v598_v2, %v568_v1  ;;  %v517_v1 = vld [vmem:[%s1150_s20 + $0xd0] sm:$0xff]  ;;  %v1442_v2 = vadd.f32 %v516_v51, %v1301_v48  ;;  %v520_v48 = vld [vmem:[%s1150_s20 + $0xe8] sm:$0xff] }
  0xf8   : > { %v1448_v43 = vadd.f32 %v517_v1, %v1327_v3  ;;  %v522_v3 = vld [vmem:[%s1150_s20 + $0xf8] sm:$0xff] }
  0xf9   : > { %v600_v14 = vadd.f32 %v599_v7, %v569_v8  ;;  %v579_v7 = vmul.f32 %v1434_v33, %v1434_v33  ;;  %v580_v12 = vmul.f32 %v1442_v2, %v1442_v2 }
  0xfb   : > { %v601_v17 = vadd.f32 %v600_v14, %v570_v11  ;;  %v519_v11 = vld [vmem:[%s1150_s20 + $0xe0] sm:$0xff]  ;;  %v1454_v14 = vadd.f32 %v518_v4, %v1351_v24 }
  0xfd   : > { %v602_v40 = vadd.f32 %v601_v17, %v571_v37  ;;  %v581_v37 = vmul.f32 %v1448_v43, %v1448_v43  ;;  %v1459_v17 = vadd.f32 %v519_v11, %v479_v57  ;;  %v582_v26 = vmul.f32 %v1454_v14, %v1454_v14 }
  0xff   : > { %v603_v45 = vadd.f32 %v602_v40, %v572_v21  ;;  %v521_v21 = vld [vmem:[%s1150_s20 + $0xf0] sm:$0xff]  ;;  %v488_v40 = vpop.f32.mrf.mxu3  ;;  %v583_v24 = vmul.f32 %v1459_v17, %v1459_v17 }
 0x100   : > { %v1469_v31 = vadd.f32 %v521_v21, %v485_v42  ;;  %v554_v32 = vadd.f32 %v522_v3, %v488_v40 }
 0x101   : > { %v604_v36 = vadd.f32 %v603_v45, %v573_v27  ;;  %v1465_v27 = vadd.f32 %v520_v48, %v482_v19 }
 0x103   : > { %v605_v41 = vadd.f32 %v604_v36, %v574_v34  ;;  %v584_v57 = vmul.f32 %v1465_v27, %v1465_v27 }
 0x105   : > { %v606_v50 = vadd.f32 %v605_v41, %v575_v38  ;;  %v585_v38 = vmul.f32 %v1469_v31, %v1469_v31  ;;  %v586_v41 = vmul.f32 %v554_v32, %v554_v32 }
 0x107   : > { %v607_v58 = vadd.f32 %v606_v50, %v576_v49 }
 0x109   : > { %v608_v61 = vadd.f32 %v607_v58, %v577_v60 }
 0x10b   : > { %v609_v8 = vadd.f32 %v608_v61, %v578_v63 }
 0x10d   : > { %v610_v15 = vadd.f32 %v609_v8, %v579_v7 }
 0x10f   : > { %v611_v18 = vadd.f32 %v610_v15, %v580_v12 }
 0x111   : > { %v612_v45 = vadd.f32 %v611_v18, %v581_v37 }
 0x113   : > { %v613_v29 = vadd.f32 %v612_v45, %v582_v26 }
 0x115   : > { %v614_v34 = vadd.f32 %v613_v29, %v583_v24  ;;  %v624_v24 = vld [vmem:[%s247_s23] sm:$0x1] }
 0x117   : > { %v615_v36 = vadd.f32 %v614_v34, %v584_v57 }
 0x119   : > { %v616_v39 = vadd.f32 %v615_v36, %v585_v38 }
 0x11b   : > { %v617_v19 = vadd.f32 %v616_v39, %v586_v41 }
 0x11d   : > { %v618_v49 = vrot.slane %v617_v19, 4 }
 0x11f   : > { %v619_v50 = vadd.f32 %v618_v49, %v617_v19 }
 0x121   : > { %v620_v51 = vrot.slane %v619_v50, 2 }
 0x123   : > { %v621_v58 = vadd.f32 %v620_v51, %v619_v50 }
 0x125   : > { %v622_v60 = vrot.slane %v621_v58, 1 }
 0x127   : > { %v623_v63 = vadd.f32 %v622_v60, %v621_v58 }
 0x129   : > { %928 = vrsqrt.f32 %v623_v63  ;;  %vm632_vm1 = vcmp.eq.f32.partialorder %v623_v63, inf  ;;  %v635_v12 = vand.u32 2147483648, %v623_v63  ;;  %vm634_vm2 = vcmp.eq.f32.partialorder %v623_v63, 0.0 }
 0x12f   : > { %v929_v42 = vpop.eup %928 }
 0x130   : > { %v626_v1 = vmul.f32 %v929_v42, %v623_v63 }
 0x132   : > { %v627_v61 = vmul.f32 %v929_v42, %v626_v1 }
 0x134   : > { %v628_v4 = vmul.f32 0.5, %v627_v61 }
 0x136   : > { %v629_v7 = vsub.f32 1.5, %v628_v4 }
 0x138   : > { %v630_v8 = vmul.f32 %v929_v42, %v629_v7 }
 0x13a   : > { %v631_v11 = vmul.f32 %v630_v8, %v623_v63 }
 0x13c   : > { %v633_v15 = vsel %vm632_vm1, %v623_v63, %v631_v11 }
 0x13d   : > { %v636_v48 = vsel %vm634_vm2, %v635_v12, %v633_v15 }
 0x13e   : > { %930 = vrcp.f32 %v636_v48  ;;  %v648_v40 = vand.u32 2147483648, %v636_v48  ;;  %v646_v26 = vand.u32 2147483647, %v636_v48  ;;  %vm642_vm4 = vweird.f32 %v636_v48 }
 0x140   : > { %v649_v29 = vor.u32 1.1754944e-38, %v648_v40  ;;  %vm647_vm6 = vcmp.eq.f32.partialorder %v646_v26, 8.507059e+37 }
 0x144   : > { %v931_v37 = vpop.eup %930 }
 0x145   : > { %v638_v18 = vmul.f32 %v931_v37, %v636_v48  ;;  %vm643_vm3 = vweird.f32 %v931_v37 }
 0x146   : > { %vm644_vm5 = vmor %vm642_vm4, %vm643_vm3 }
 0x147   : > { %v639_v21 = vsub.f32 1.0, %v638_v18 }
 0x149   : > { %v640_v3 = vmul.f32 %v931_v37, %v639_v21 }
 0x14b   : > { %v641_v45 = vadd.f32 %v931_v37, %v640_v3 }
 0x14d   : > { %v645_v57 = vsel %vm644_vm5, %v931_v37, %v641_v45 }
 0x14e   : > { %v650_v34 = vsel %vm647_vm6, %v649_v29, %v645_v57 }
 0x14f   : > { %v651_v36 = vmul.f32 %v650_v34, %v624_v24 }
 0x151   : > { %v1479_v38 = vperm.slane %v651_v36, 0 }
 0x153   : > { %v686_v41 = vmul.f32 %v1479_v38, %v554_v32  ;;  %v655_v39 = vmul.f32 %v1479_v38, %v1310_v55  ;;  %v656_v19 = vmul.f32 %v1479_v38, %v1305_v52  ;;  %v657_v49 = vmul.f32 %v1479_v38, %v1312_v56 }
 0x154   : > { %v658_v55 = vmul.f32 %v1479_v38, %v1317_v59  ;;  %v659_v52 = vmul.f32 %v1479_v38, %v1324_v0  ;;  %v660_v56 = vmul.f32 %v1479_v38, %v1331_v6  ;;  %v661_v32 = vmul.f32 %v1479_v38, %v1335_v9 }
 0x155   : > { %718 = vst [vmem:[%s1490_s9 + $0xf8] sm:$0xff] %v686_v41  ;;  %v662_v50 = vmul.f32 %v1479_v38, %v1348_v22  ;;  %v663_v59 = vmul.f32 %v1479_v38, %v1346_v20  ;;  %v664_v0 = vmul.f32 %v1479_v38, %v1353_v25  ;;  %v665_v6 = vmul.f32 %v1479_v38, %v1360_v30 }
 0x156   : > { %687 = vst [vmem:[%s1490_s9] sm:$0xff] %v655_v39  ;;  %v666_v9 = vmul.f32 %v1479_v38, %v1365_v35  ;;  %v667_v20 = vmul.f32 %v1479_v38, %v1370_v44  ;;  %v668_v22 = vmul.f32 %v1479_v38, %v1376_v53  ;;  %v669_v25 = vmul.f32 %v1479_v38, %v1380_v46 }
 0x157   : > { %688 = vst [vmem:[%s1490_s9 + $0x8] sm:$0xff] %v656_v19  ;;  %v670_v30 = vmul.f32 %v1479_v38, %v1382_v62  ;;  %v671_v35 = vmul.f32 %v1479_v38, %v1389_v5  ;;  %v672_v44 = vmul.f32 %v1479_v38, %v1397_v13  ;;  %v673_v53 = vmul.f32 %v1479_v38, %v1403_v16 }
 0x158   : > { %689 = vst [vmem:[%s1490_s9 + $0x10] sm:$0xff] %v657_v49  ;;  %v674_v46 = vmul.f32 %v1479_v38, %v1409_v23  ;;  %v675_v62 = vmul.f32 %v1479_v38, %v1415_v28  ;;  %v676_v5 = vmul.f32 %v1479_v38, %v1421_v54  ;;  %v677_v13 = vmul.f32 %v1479_v38, %v1425_v47 }
 0x159   : > { %690 = vst [vmem:[%s1490_s9 + $0x18] sm:$0xff] %v658_v55  ;;  %v678_v16 = vmul.f32 %v1479_v38, %v1427_v10  ;;  %v679_v23 = vmul.f32 %v1479_v38, %v1434_v33  ;;  %v680_v28 = vmul.f32 %v1479_v38, %v1442_v2  ;;  %v681_v54 = vmul.f32 %v1479_v38, %v1448_v43 }
 0x15a   : > { %691 = vst [vmem:[%s1490_s9 + $0x20] sm:$0xff] %v659_v52  ;;  %v682_v47 = vmul.f32 %v1479_v38, %v1454_v14  ;;  %v683_v10 = vmul.f32 %v1479_v38, %v1459_v17  ;;  %v684_v33 = vmul.f32 %v1479_v38, %v1465_v27  ;;  %v685_v2 = vmul.f32 %v1479_v38, %v1469_v31 }
 0x15b   : > { %692 = vst [vmem:[%s1490_s9 + $0x28] sm:$0xff] %v660_v56 }
 0x15c   : > { %693 = vst [vmem:[%s1490_s9 + $0x30] sm:$0xff] %v661_v32 }
 0x15d   : > { %694 = vst [vmem:[%s1490_s9 + $0x38] sm:$0xff] %v662_v50 }
 0x15e   : > { %695 = vst [vmem:[%s1490_s9 + $0x40] sm:$0xff] %v663_v59 }
 0x15f   : > { %696 = vst [vmem:[%s1490_s9 + $0x48] sm:$0xff] %v664_v0 }
 0x160   : > { %697 = vst [vmem:[%s1490_s9 + $0x50] sm:$0xff] %v665_v6 }
 0x161   : > { %698 = vst [vmem:[%s1490_s9 + $0x58] sm:$0xff] %v666_v9 }
 0x162   : > { %699 = vst [vmem:[%s1490_s9 + $0x60] sm:$0xff] %v667_v20 }
 0x163   : > { %700 = vst [vmem:[%s1490_s9 + $0x68] sm:$0xff] %v668_v22 }
 0x164   : > { %701 = vst [vmem:[%s1490_s9 + $0x70] sm:$0xff] %v669_v25 }
 0x165   : > { %702 = vst [vmem:[%s1490_s9 + $0x78] sm:$0xff] %v670_v30 }
 0x166   : > { %703 = vst [vmem:[%s1490_s9 + $0x80] sm:$0xff] %v671_v35 }
 0x167   : > { %704 = vst [vmem:[%s1490_s9 + $0x88] sm:$0xff] %v672_v44 }
 0x168   : > { %705 = vst [vmem:[%s1490_s9 + $0x90] sm:$0xff] %v673_v53 }
 0x169   : > { %706 = vst [vmem:[%s1490_s9 + $0x98] sm:$0xff] %v674_v46 }
 0x16a   : > { %707 = vst [vmem:[%s1490_s9 + $0xa0] sm:$0xff] %v675_v62 }
 0x16b   : > { %708 = vst [vmem:[%s1490_s9 + $0xa8] sm:$0xff] %v676_v5 }
 0x16c   : > { %709 = vst [vmem:[%s1490_s9 + $0xb0] sm:$0xff] %v677_v13 }
 0x16d   : > { %710 = vst [vmem:[%s1490_s9 + $0xb8] sm:$0xff] %v678_v16 }
 0x16e   : > { %711 = vst [vmem:[%s1490_s9 + $0xc0] sm:$0xff] %v679_v23 }
 0x16f   : > { %712 = vst [vmem:[%s1490_s9 + $0xc8] sm:$0xff] %v680_v28 }
 0x170   : > { %713 = vst [vmem:[%s1490_s9 + $0xd0] sm:$0xff] %v681_v54 }
 0x171   : > { %714 = vst [vmem:[%s1490_s9 + $0xd8] sm:$0xff] %v682_v47 }
 0x172   : > { %715 = vst [vmem:[%s1490_s9 + $0xe0] sm:$0xff] %v683_v10 }
 0x173   : > { %716 = vst [vmem:[%s1490_s9 + $0xe8] sm:$0xff] %v684_v33 }
 0x174   : > { %717 = vst [vmem:[%s1490_s9 + $0xf0] sm:$0xff] %v685_v2 }
 0x175   : > { %989 = shalt.err (!%p986_p5)
}
 0x176   : > { %s1033_s8 = smov 128   ;;  %s1034_s22 = smov 512  }
 0x177   : > { %s1035_s23 = smov 8  }
 0x178   : > { %878 = dma.vmem_to_hbm [thread:$0]  (%p1110_p10), %s732_s19, 4096, %s734_s5, %s720_s29, %s1033_s8, %s1034_s22, %s1035_s23  }
 0x179 PF: > { %p889_p7 = scmp.ge.s32.totalorder %s1028_s18, 2  ;;  %s748_s9 = sand.u32 1, %s1016_s15  }
 0x17a   : > { %s749_s10 = scalar_lea.sflag [#allocation4], %s748_s9 }
 0x17b   : > { %p885_p8 = pnand %p889_p7, %p1114_p11 }
 0x17d   : > { %p886_p9 = pneg %p885_p8 }
 0x17f   : > { %1011 = dma.done.wait (%p886_p9), %s749_s10, 4096  }
 0x180   : > { %1013 = vsyncadd (%p886_p9), %s749_s10, 4294963200  ;;  %p17_p0 = scmp.ge.s32.totalorder %s1086_s21, 6   ;;  %s1623_s15 = smov %s1020_s16 }
 0x181   : > { %s1624_s16 = smov %s1024_s17  ;;  %s1625_s17 = smov %s1098_s24 }
 0x182   : > { %s1626_s18 = smov %s1086_s21  ;;  %19 = sbr.rel (!%p17_p0) target bundleno = 5 (0x5), region = 87 }
 0x187   :  { %755 = vsyncpa [#allocation3], 1 }
 0x188   :  { %757 = vsyncpa [#allocation3 + $0x1], 1 }
 0x189   :  { %758 = vsyncpa [#allocation4], 1 }
 0x18a   :  { %760 = vsyncpa [#allocation4 + $0x1], 1 }

</bundles_post_ra>
